<compile_context>
chip_gen: v7x
topology: tpu7x:2x2x1
jax: 0.10.0
libtpu: 0.0.40
codegen_flags: <defaults>
</compile_context>

<pallas_src>
import jax
import jax.numpy as jnp
from jax.experimental import pallas as pl
from jax.experimental.pallas import tpu as pltpu


def _round_up(x: int, m: int) -> int:
    return ((x + m - 1) // m) * m


def _sublane_multiple(dtype) -> int:
    # Sub-32-bit dtypes pack along sublanes: (8,128) f32, (16,128) bf16, (32,128) int8.
    itemsize = jnp.dtype(dtype).itemsize
    return {4: 8, 2: 16, 1: 32}.get(itemsize, 8)


def _largest_tile(total: int, unit: int, target: int) -> int:
    """Largest multiple of `unit` that divides `total` and is <= max(target, unit)."""
    n = total // unit
    d = min(n, max(1, target // unit))
    while n % d != 0:
        d -= 1
    return d * unit


def _chip_config():
    try:
        kind = jax.devices()[0].device_kind.lower()
    except Exception:  # pragma: no cover - defensive
        kind = ""
    is_v7 = "7" in kind
    is_v5 = "v5" in kind
    if is_v7:
        # 64 MiB VMEM per TensorCore, 2 TCs/chip, ~3.2 TB/s HBM.
        return dict(x_tile_bytes=8 << 20, vmem_limit=48 << 20,
                    min_batch_tiles=2, bf16_vpu=True)
    # v5e / v6e: 128 MiB physical VMEM, single TensorCore.
    return dict(x_tile_bytes=16 << 20, vmem_limit=96 << 20,
                min_batch_tiles=1, bf16_vpu=not is_v5)


# ----------------------------------------------------------------------------
# Kernels
# ----------------------------------------------------------------------------
def _make_single_k_kernel(n_chunks, mul_dtype):
    """F fits in a single feature tile: no scratch, no predicated branches."""

    def kernel(x_ref, w_ref, b_ref, o_ref):
        part = (x_ref[:, 0:128].astype(mul_dtype)
                * w_ref[:, 0:128].astype(mul_dtype)).astype(jnp.float32)
        for c in range(1, n_chunks):          # static unroll, VALU-only adds
            lo, hi = c * 128, (c + 1) * 128
            xc = x_ref[:, lo:hi].astype(mul_dtype)
            wc = w_ref[:, lo:hi].astype(mul_dtype)
            part = part + (xc * wc).astype(jnp.float32)
        total = jnp.sum(part, axis=-1, keepdims=True)   # single XLU reduce
        o_ref[...] = (total + b_ref[0]).astype(o_ref.dtype)

    return kernel


def _make_multi_k_kernel(tk, n_chunks, mul_dtype, pin_weight):
    """Feature dim tiled along the last grid axis; lane-dense f32 accumulator."""

    def kernel(x_ref, w_ref, b_ref, o_ref, acc_ref):
        k = pl.program_id(1)

        @pl.when(k == 0)
        def _init():
            acc_ref[...] = jnp.zeros_like(acc_ref)

        part = acc_ref[...]
        for c in range(n_chunks):             # static unroll, VALU-only adds
            lo, hi = c * 128, (c + 1) * 128
            xc = x_ref[:, lo:hi].astype(mul_dtype)
            if pin_weight:
                # Weight row is resident in VMEM; slice the current 128 lanes.
                start = pl.multiple_of(k * tk + lo, 128)
                wc = w_ref[:, pl.ds(start, 128)].astype(mul_dtype)
            else:
                wc = w_ref[:, lo:hi].astype(mul_dtype)
            part = part + (xc * wc).astype(jnp.float32)
        acc_ref[...] = part

        @pl.when(k == pl.num_programs(1) - 1)
        def _finalize():
            total = jnp.sum(acc_ref[...], axis=-1, keepdims=True)  # one XLU reduce
            o_ref[...] = (total + b_ref[0]).astype(o_ref.dtype)

    return kernel


# ----------------------------------------------------------------------------
# Wrapper
# ----------------------------------------------------------------------------
def linear_forward(x, weight, bias):
    """x: (B, F), weight: (1, F) torch layout, bias: (1,). Returns (B, 1)."""
    B, F = x.shape
    assert weight.shape == (1, F)

    cfg = _chip_config()
    itemsize = jnp.dtype(x.dtype).itemsize
    sub = _sublane_multiple(x.dtype)

    # ---- minimal, dtype-aware padding (no-op when already aligned) ---------
    b_pad = _round_up(B, sub)
    f_pad = _round_up(F, 128)
    if b_pad == B and f_pad == F:
        x_in = x
    else:
        x_in = jnp.pad(x, ((0, b_pad - B), (0, f_pad - F)))
    w_row = weight.astype(x.dtype)
    if f_pad != F:
        w_row = jnp.pad(w_row, ((0, 0), (0, f_pad - F)))
    bias_1d = jnp.asarray(bias, dtype=jnp.float32).reshape((1,))

    # ---- tile sizing: divisors of padded dims, sized to the chip's VMEM ----
    tk = _largest_tile(f_pad, 128, min(f_pad, 2048))
    tm_target = max(sub, cfg["x_tile_bytes"] // (tk * itemsize))
    if cfg["min_batch_tiles"] > 1 and b_pad >= cfg["min_batch_tiles"] * sub:
        # v7x: keep >= 2 batch tiles so both TensorCores get work.
        tm_target = min(tm_target, b_pad // cfg["min_batch_tiles"])
    tm = _largest_tile(b_pad, sub, tm_target)
    # Small batch: spend the leftover VMEM budget on wider feature tiles
    # (capped at 4096 lanes = 32 unrolled chunks per step).
    tk = _largest_tile(
        f_pad, 128,
        min(f_pad, 4096, max(tk, cfg["x_tile_bytes"] // (tm * itemsize))))

    nb, nk = b_pad // tm, f_pad // tk
    n_chunks = tk // 128

    # bf16 VPU multiply on v6e/v7x; f32 everywhere else (v5e has no bf16 VALU).
    mul_dtype = x.dtype if (x.dtype == jnp.bfloat16 and cfg["bf16_vpu"]) else jnp.float32

    out_shape = jax.ShapeDtypeStruct((b_pad, 1), x.dtype)
    bias_spec = pl.BlockSpec(memory_space=pltpu.MemorySpace.SMEM)

    if nk == 1:
        # -------- single-K fast path: whole feature row per step ------------
        compiler_params = pltpu.CompilerParams(
            dimension_semantics=("parallel",),
            vmem_limit_bytes=cfg["vmem_limit"],
        )
        out = pl.pallas_call(
            _make_single_k_kernel(n_chunks, mul_dtype),
            out_shape=out_shape,
            grid=(nb,),
            in_specs=[
                pl.BlockSpec((tm, f_pad), lambda i: (i, 0)),   # x tile
                pl.BlockSpec((1, f_pad), lambda i: (0, 0)),    # weight row (pinned)
                bias_spec,                                     # bias scalar (SMEM)
            ],
            out_specs=pl.BlockSpec((tm, 1), lambda i: (i, 0)),
            compiler_params=compiler_params,
        )(x_in, w_row, bias_1d)
    else:
        # -------- tiled-K path with lane-dense accumulator -------------------
        pin_weight = f_pad * itemsize <= (4 << 20)
        if pin_weight:
            w_spec = pl.BlockSpec((1, f_pad), lambda i, k: (0, 0))   # constant block -> no re-DMA
        else:
            w_spec = pl.BlockSpec((1, tk), lambda i, k: (0, k))
        compiler_params = pltpu.CompilerParams(
            dimension_semantics=("parallel", "arbitrary"),
            vmem_limit_bytes=cfg["vmem_limit"],
        )
        out = pl.pallas_call(
            _make_multi_k_kernel(tk, n_chunks, mul_dtype, pin_weight),
            out_shape=out_shape,
            grid=(nb, nk),                                     # reduction axis last
            in_specs=[
                pl.BlockSpec((tm, tk), lambda i, k: (i, k)),   # x tile
                w_spec,                                        # weight
                bias_spec,                                     # bias scalar (SMEM)
            ],
            out_specs=pl.BlockSpec((tm, 1), lambda i, k: (i, 0)),
            scratch_shapes=[pltpu.VMEM((tm, 128), jnp.float32)],  # lane-dense accumulator
            compiler_params=compiler_params,
        )(x_in, w_row, bias_1d)

    return out if b_pad == B else out[:B]


if __name__ == "__main__":
    # Small shapes consistent with the module: batch=8, n_feature=2
    batch, n_feature = 8, 2

    key = jax.random.PRNGKey(0)
    kx, kw, kb = jax.random.split(key, 3)

    x = jax.random.normal(kx, (batch, n_feature), dtype=jnp.float32)

    # Deterministic init mimicking nn.Linear's uniform(-1/sqrt(F), 1/sqrt(F))
    bound = 1.0 / jnp.sqrt(jnp.float32(n_feature))
    weight = jax.random.uniform(
        kw, (1, n_feature), dtype=jnp.float32, minval=-bound, maxval=bound
    )  # torch layout (out_features, in_features)
    bias = jax.random.uniform(
        kb, (1,), dtype=jnp.float32, minval=-bound, maxval=bound
    )

    y = linear_forward(x, weight, bias)
    y = jax.block_until_ready(y)

    # Reference check against plain JAX (same math as torch's linear)
    y_ref = x @ weight.T + bias.reshape(1, 1)
    assert y.shape == (batch, 1)
    assert jnp.allclose(y, y_ref, atol=1e-5, rtol=1e-5)

    print("KERNEL_OK")
</pallas_src>

<mosaic_0001>
module attributes {stable_mosaic.version = 11 : i64} {
  func.func @kernel(%arg0: i32, %arg1: memref<8x128xf32, #tpu.memory_space<vmem>>, %arg2: memref<1x128xf32, #tpu.memory_space<vmem>>, %arg3: memref<1xf32, #tpu.memory_space<smem>>, %arg4: memref<8x1xf32, #tpu.memory_space<vmem>>) attributes {dimension_semantics = [#tpu.dimension_semantics<parallel>], iteration_bounds = array<i64: 1>, scalar_prefetch = 0 : i64, scratch_operands = 0 : i64, tpu.core_type = #tpu.core_type<tc>, window_params = [{transform_indices = @transform_0, window_bounds = array<i64: 8, 128>}, {pipeline_mode = #tpu.pipeline_mode<synchronous>, transform_indices = @transform_1, window_bounds = array<i64: 1, 128>}, {transform_indices = @transform_2, window_bounds = array<i64: 1>}, {transform_indices = @transform_3, window_bounds = array<i64: 8, 1>}]} {
    %c0 = arith.constant 0 : index
    %c0_0 = arith.constant 0 : index
    %0 = vector.load %arg1[%c0, %c0_0] : memref<8x128xf32, #tpu.memory_space<vmem>>, vector<8x128xf32>
    %c0_1 = arith.constant 0 : index
    %c0_2 = arith.constant 0 : index
    %1 = vector.load %arg2[%c0_1, %c0_2] : memref<1x128xf32, #tpu.memory_space<vmem>>, vector<1x128xf32>
    %2 = vector.broadcast %1 : vector<1x128xf32> to vector<8x128xf32>
    %3 = arith.mulf %0, %2 : vector<8x128xf32>
    %cst = arith.constant dense<0.000000e+00> : vector<8xf32>
    %4 = vector.multi_reduction <add>, %3, %cst [1] : vector<8x128xf32> to vector<8xf32>
    %5 = vector.shape_cast %4 : vector<8xf32> to vector<8x1xf32>
    %c0_3 = arith.constant 0 : index
    %6 = memref.load %arg3[%c0_3] : memref<1xf32, #tpu.memory_space<smem>>
    %7 = vector.broadcast %6 : f32 to vector<8x1xf32>
    %8 = arith.addf %5, %7 : vector<8x1xf32>
    %c0_4 = arith.constant 0 : index
    %c0_5 = arith.constant 0 : index
    %9 = vector.load %arg4[%c0_4, %c0_5] : memref<8x1xf32, #tpu.memory_space<vmem>>, vector<8x1xf32>
    tpu.vector_store %arg4[%c0_4, %c0_5], %8 {strides = array<i32>} : memref<8x1xf32, #tpu.memory_space<vmem>>, vector<8x1xf32>,
    return
  }
  func.func @transform_0(%arg0: i32) -> (i32, i32) {
    %c0_i32 = arith.constant 0 : i32
    %c0_i32_0 = arith.constant 0 : i32
    return %arg0, %c0_i32 : i32, i32
  }
  func.func @transform_1(%arg0: i32) -> (i32, i32) {
    %c0_i32 = arith.constant 0 : i32
    %c0_i32_0 = arith.constant 0 : i32
    %c0_i32_1 = arith.constant 0 : i32
    return %c0_i32, %c0_i32_0 : i32, i32
  }
  func.func @transform_2(%arg0: i32) -> i32 {
    %c0_i32 = arith.constant 0 : i32
    %c0_i32_0 = arith.constant 0 : i32
    return %c0_i32 : i32
  }
  func.func @transform_3(%arg0: i32) -> (i32, i32) {
    %c0_i32 = arith.constant 0 : i32
    %c0_i32_0 = arith.constant 0 : i32
    return %arg0, %c0_i32 : i32, i32
  }
}

</mosaic_0001>

<bundles_post_ra>
// kernel: tpu_custom_call.1
= control target key start
LH: loop header
LB: loop body
LE: loop exit
PB: predicated region body
PF: predicated region fallthrough
CT: control target
= control target key end

     0   :  { %9 = vsyncpa [#allocation4], 0  ;;  %s210_s0 = inlined_call_operand.hbm [shape: f32[8,128], index: 0, kind: input, shape index: {}]   ;;  %s211_s1 = inlined_call_operand.hbm [shape: f32[1,128], index: 1, kind: input, shape index: {}]   ;;  %s212_s2 = inlined_call_operand.<no memory space> [shape: f32[1], index: 2, kind: input, shape index: {}]   ;;  %s213_s3 = inlined_call_operand.hbm [shape: f32[8,1], index: 3, kind: output, shape index: {}]  }
   0x1   :  { %10 = vsyncpa [#allocation7], 0 }
   0x2   :  { %11 = vsyncpa [#allocation5], 0  ;;  %s148_s12 = smov [#allocation3]   ;;  %s149_s14 = smov [#allocation6]  }
   0x3   :  { %s18_s13 = sshll.u32 %s148_s12, 4  ;;  %s28_s15 = sshll.u32 %s149_s14, 4  ;;  %s19_s13 = int_to_ptr.vmem [resolvable:$true] %s18_s13  ;;  %s29_s15 = int_to_ptr.vmem [resolvable:$true] %s28_s15 }
   0x4   :  { %s76_s18 = scalar_lea.hbm %s210_s0, 128 }
   0x5   :  { %p77_p0 = scmp.ne.s32.totalorder %s210_s0, %s76_s18  ;;  %p80_p1 = scmp.lt.u32.totalorder %s76_s18, %s210_s0 }
   0x7   :  { %p82_p2 = pnand %p80_p1, %p77_p0 }
   0x9   :  { %85 = shalt.err (!%p82_p2)
}
   0xa   :  { %s86_s23 = scalar_lea.vmem %s19_s13, 128  ;;  %p91_p4 = scmp.lt.s32.totalorder %s19_s13, %s19_s13 }
   0xb   :  { %p87_p3 = scmp.ne.s32.totalorder %s19_s13, %s86_s23  ;;  %p92_p5 = scmp.lt.s32.totalorder %s86_s23, %s86_s23 }
   0xd   :  { %p93_p6 = por %p92_p5, %p91_p4 }
   0xf   :  { %p94_p7 = pnand %p93_p6, %p87_p3 }
  0x11   :  { %97 = shalt.err (!%p94_p7)
}
  0x12   :  { %21 = dma.hbm_to_vmem [thread:$0]  %s210_s0, 128, %s19_s13, [#allocation4]  }
  0x13   :  { %s98_s28 = scalar_lea.hbm %s211_s1, 16 }
  0x14   :  { %p99_p8 = scmp.ne.s32.totalorder %s211_s1, %s98_s28  ;;  %p102_p9 = scmp.lt.u32.totalorder %s98_s28, %s211_s1 }
  0x16   :  { %p104_p10 = pnand %p102_p9, %p99_p8 }
  0x18   :  { %107 = shalt.err (!%p104_p10)
}
  0x19   :  { %s108_s6 = scalar_lea.vmem %s29_s15, 16  ;;  %s112_s7 = scalar_lea.vmem %s29_s15, 32 }
  0x1a   :  { %p109_p11 = scmp.ne.s32.totalorder %s29_s15, %s108_s6  ;;  %p113_p12 = scmp.lt.s32.totalorder %s29_s15, %s29_s15 }
  0x1b   :  { %p114_p13 = scmp.lt.s32.totalorder %s112_s7, %s108_s6 }
  0x1d   :  { %p115_p0 = por %p114_p13, %p113_p12 }
  0x1f   :  { %p116_p1 = pnand %p115_p0, %p109_p11 }
  0x21   :  { %119 = shalt.err (!%p116_p1)
}
  0x22   :  { %31 = dma.hbm_to_vmem [thread:$0]  %s211_s1, 16, %s29_s15, [#allocation7]  }
  0x23   :  { %142 = dma.done.wait [#allocation4], 128  }
  0x24   :  { %143 = vsyncadd [#allocation4], 4294967168 }
  0x25   :  { %144 = dma.done.wait [#allocation7], 16  }
  0x26   :  { %145 = vsyncadd [#allocation7], 4294967280  ;;  %v40_v0 = vld [vmem:[#allocation3] sm:$0xff]  ;;  %v72_v1 = vld [vmem:[#allocation6] ss:$0 sm:$0xff]  ;;  %v52_v3 = vstv %s212_s2  ;;  %s150_s11 = smov [#allocation8]  }
  0x27   :  { %v48_v2 = vmul.f32 %v72_v1, %v40_v0  ;;  %s62_s12 = sshll.u32 %s150_s11, 4  ;;  %vm54_vm0 = vcmask 7168   ;;  %s63_s12 = int_to_ptr.vmem [resolvable:$true] %s62_s12 }
  0x28   :  { %s120_s1 = scalar_lea.vmem %s63_s12, 128  ;;  %p125_p3 = scmp.lt.s32.totalorder %s63_s12, %s63_s12 }
  0x29   :  { %49 = vadd.xlane.f32.xlu0 %v48_v2  ;;  %p121_p2 = scmp.ne.s32.totalorder %s63_s12, %s120_s1  ;;  %p126_p4 = scmp.lt.s32.totalorder %s120_s1, %s120_s1 }
  0x2b   :  { %p127_p5 = por %p126_p4, %p125_p3 }
  0x2d   :  { %p128_p6 = pnand %p127_p5, %p121_p2 }
  0xb6   :  { %v50_v4 = vpop.xlane.xlu0 %49 }
  0xb7   :  { %v53_v5 = vadd.f32 %v52_v3, %v50_v4 }
  0xb9   :  { %55 = vst.msk [vmem:[#allocation8] sm:$0xff] %vm54_vm0, %v53_v5 }
  0xba   :  { %131 = shalt.err (!%p128_p6)
}
  0xbb   :  { %s132_s15 = scalar_lea.hbm %s213_s3, 128 }
  0xbc   :  { %p133_p7 = scmp.ne.s32.totalorder %s213_s3, %s132_s15  ;;  %p136_p8 = scmp.lt.u32.totalorder %s132_s15, %s213_s3 }
  0xbe   :  { %p138_p9 = pnand %p136_p8, %p133_p7 }
  0xc0   :  { %141 = shalt.err (!%p138_p9)
}
  0xc1   :  { %65 = dma.vmem_to_hbm [thread:$0]  %s63_s12, 128, %s213_s3, [#allocation5]  }
  0xc2   :  { %146 = dma.done.wait [#allocation5], 128  }
  0xc3   :  { %147 = vsyncadd [#allocation5], 4294967168 }
  0xc4   :  { %69 = vsyncpa [#allocation4], 1 }
  0xc5   :  { %70 = vsyncpa [#allocation7], 1 }
  0xc6   :  { %71 = vsyncpa [#allocation5], 1 }

</bundles_post_ra>
